<compile_context>
chip_gen: v7x
topology: tpu7x:2x2x1
jax: 0.10.0
libtpu: 0.0.40
codegen_flags: <defaults>
</compile_context>

<pallas_src>
import jax
import jax.numpy as jnp
from jax.experimental import pallas as pl
from jax.experimental.pallas import tpu as pltpu


def _lstm_fc_kernel(x_ref, wih_ref, whh_ref, b_ref, h0_ref, c0_ref,
                    w1_ref, b1_ref, w2_ref, b2_ref,
                    y_ref, hN_ref, cN_ref):
    """Single invocation: full LSTM recurrence + batched FC head.

    x_ref : (S*B, I) time-major flattened input (row r = t*B + b).
    """
    SB, _ = x_ref.shape
    B, H = h0_ref.shape
    S = SB // B                                     # static Python int

    # ---- input projection hoisted out of the recurrence (one MXU call) ----
    gates_x = (jnp.dot(x_ref[...], wih_ref[...],
                       preferred_element_type=jnp.float32)
               + b_ref[...])                        # (S*B, 4H)

    whh = whh_ref[...]                              # (H, 4H), stays resident
    h = h0_ref[...]                                 # (B, H)
    c = c0_ref[...]                                 # (B, H)

    hs = []
    # Fully unrolled static time loop: only the recurrent matmul and the gate
    # elementwise math sit on the serial critical path.
    for t in range(S):
        gates = gates_x[t * B:(t + 1) * B, :] + jnp.dot(
            h, whh, preferred_element_type=jnp.float32)          # (B, 4H)
        # Full-width nonlinearities (2 EUP pushes), then slice.
        # PyTorch gate order is [i, f, g, o].
        sig = jax.nn.sigmoid(gates)
        tg = jnp.tanh(gates)
        i_g = sig[:, 0 * H:1 * H]
        f_g = sig[:, 1 * H:2 * H]
        g_g = tg[:, 2 * H:3 * H]
        o_g = sig[:, 3 * H:4 * H]
        c = f_g * c + i_g * g_g
        h = o_g * jnp.tanh(c)
        hs.append(h)

    h_all = jnp.concatenate(hs, axis=0)             # (S*B, H), t-major rows

    # ---- FC head batched over all timesteps (fc1 -> ReLU -> fc2) ----
    z = jnp.maximum(
        jnp.dot(h_all, w1_ref[...], preferred_element_type=jnp.float32)
        + b1_ref[...], 0.0)                         # (S*B, H)
    y = (jnp.dot(z, w2_ref[...], preferred_element_type=jnp.float32)
         + b2_ref[0])                               # (S*B, 1); b2 = SMEM scalar

    # Single stores at the very end (no per-step writebacks).
    y_ref[...] = y
    hN_ref[...] = h
    cN_ref[...] = c


def my_rnn_forward(inputs, hidden_state, cell, params):
    """inputs: (batch, seq, input_size); hidden_state/cell: (1, batch, hidden).
    Returns (output (batch, seq, 1), h_n (1, batch, hidden), c_n (1, batch, hidden))."""
    B, S, I = inputs.shape
    H = params["w_hh_T"].shape[0]

    # Time-major, flattened: row r = t*B + b.
    x_flat = jnp.transpose(inputs, (1, 0, 2)).reshape(S * B, I).astype(jnp.float32)
    h0 = hidden_state[0].astype(jnp.float32)        # (B, H)
    c0 = cell[0].astype(jnp.float32)                # (B, H)

    vmem = lambda: pl.BlockSpec(memory_space=pltpu.MemorySpace.VMEM)
    smem = lambda: pl.BlockSpec(memory_space=pltpu.MemorySpace.SMEM)

    y_flat, h_n, c_n = pl.pallas_call(
        _lstm_fc_kernel,
        out_shape=(
            jax.ShapeDtypeStruct((S * B, 1), jnp.float32),
            jax.ShapeDtypeStruct((B, H), jnp.float32),
            jax.ShapeDtypeStruct((B, H), jnp.float32),
        ),
        in_specs=[
            vmem(),   # x_flat           (S*B, I)
            vmem(),   # W_ih^T           (I, 4H)
            vmem(),   # W_hh^T           (H, 4H)
            vmem(),   # b_ih + b_hh      (1, 4H)
            vmem(),   # h0               (B, H)
            vmem(),   # c0               (B, H)
            vmem(),   # fc1 W^T          (H, H)
            vmem(),   # fc1 b            (1, H)
            vmem(),   # fc2 W^T          (H, 1)
            smem(),   # fc2 b            (1,)  scalar in SMEM
        ],
        out_specs=(vmem(), vmem(), vmem()),
    )(x_flat, params["w_ih_T"], params["w_hh_T"], params["b_gates"],
      h0, c0, params["fc1_w_T"], params["fc1_b"], params["fc2_w_T"],
      params["fc2_b"])

    # (S*B, 1) -> (S, B, 1) -> batch_first (B, S, 1), matching PyTorch.
    output = jnp.transpose(y_flat.reshape(S, B, 1), (1, 0, 2))
    return output, h_n[None], c_n[None]


def init_params(key, hidden_size, input_size=2):
    """Deterministic parameter init matching the PyTorch module's shapes."""
    ks = jax.random.split(key, 8)
    bound = 1.0 / jnp.sqrt(hidden_size)
    u = lambda k, shape: jax.random.uniform(k, shape, jnp.float32, -bound, bound)
    w_ih = u(ks[0], (4 * hidden_size, input_size))     # PyTorch weight_ih_l0
    w_hh = u(ks[1], (4 * hidden_size, hidden_size))    # PyTorch weight_hh_l0
    b_ih = u(ks[2], (4 * hidden_size,))
    b_hh = u(ks[3], (4 * hidden_size,))
    fc1_w = u(ks[4], (hidden_size, hidden_size))
    fc1_b = u(ks[5], (hidden_size,))
    fc2_w = u(ks[6], (1, hidden_size))
    fc2_b = u(ks[7], (1,))
    return {
        "w_ih_T": w_ih.T,                              # (I, 4H)
        "w_hh_T": w_hh.T,                              # (H, 4H)
        "b_gates": (b_ih + b_hh)[None, :],             # (1, 4H)
        "fc1_w_T": fc1_w.T,                            # (H, H)
        "fc1_b": fc1_b[None, :],                       # (1, H)
        "fc2_w_T": fc2_w.T,                            # (H, 1)
        "fc2_b": fc2_b,                                # (1,)  -> SMEM scalar
    }


def _reference(inputs, h0, c0, p):
    """Pure-JAX reference (lax.scan) for correctness check."""
    H = p["w_hh_T"].shape[0]
    x_tm = jnp.transpose(inputs, (1, 0, 2))

    def step(carry, x_t):
        h, c = carry
        gates = x_t @ p["w_ih_T"] + h @ p["w_hh_T"] + p["b_gates"]
        i = jax.nn.sigmoid(gates[:, :H])
        f = jax.nn.sigmoid(gates[:, H:2 * H])
        g = jnp.tanh(gates[:, 2 * H:3 * H])
        o = jax.nn.sigmoid(gates[:, 3 * H:])
        c = f * c + i * g
        h = o * jnp.tanh(c)
        return (h, c), h

    (h_n, c_n), hs = jax.lax.scan(step, (h0[0], c0[0]), x_tm)
    z = jnp.maximum(hs @ p["fc1_w_T"] + p["fc1_b"], 0.0)
    y = z @ p["fc2_w_T"] + p["fc2_b"]
    return jnp.transpose(y, (1, 0, 2)), h_n[None], c_n[None]


if __name__ == "__main__":
    BATCH, SEQ, INPUT, HIDDEN = 2, 8, 2, 32

    key = jax.random.PRNGKey(0)
    k_x, k_h, k_c, k_p = jax.random.split(key, 4)
    inputs = jax.random.normal(k_x, (BATCH, SEQ, INPUT), jnp.float32)
    hidden_state = jax.random.normal(k_h, (1, BATCH, HIDDEN), jnp.float32)
    cell = jax.random.normal(k_c, (1, BATCH, HIDDEN), jnp.float32)
    params = init_params(k_p, HIDDEN, INPUT)

    out, h_n, c_n = jax.block_until_ready(
        my_rnn_forward(inputs, hidden_state, cell, params))

    ref_out, ref_h, ref_c = _reference(inputs, hidden_state, cell, params)
    assert out.shape == (BATCH, SEQ, 1) and h_n.shape == (1, BATCH, HIDDEN)
    assert jnp.allclose(out, ref_out, atol=1e-5)
    assert jnp.allclose(h_n, ref_h, atol=1e-5)
    assert jnp.allclose(c_n, ref_c, atol=1e-5)

    print("KERNEL_OK")
</pallas_src>

<mosaic_0001>
module attributes {stable_mosaic.version = 11 : i64} {
  func.func @_lstm_fc_kernel(%arg0: memref<16x2xf32, #tpu.memory_space<vmem>>, %arg1: memref<2x128xf32, #tpu.memory_space<vmem>>, %arg2: memref<32x128xf32, #tpu.memory_space<vmem>>, %arg3: memref<1x128xf32, #tpu.memory_space<vmem>>, %arg4: memref<2x32xf32, #tpu.memory_space<vmem>>, %arg5: memref<2x32xf32, #tpu.memory_space<vmem>>, %arg6: memref<32x32xf32, #tpu.memory_space<vmem>>, %arg7: memref<1x32xf32, #tpu.memory_space<vmem>>, %arg8: memref<32x1xf32, #tpu.memory_space<vmem>>, %arg9: memref<1xf32, #tpu.memory_space<smem>>, %arg10: memref<16x1xf32, #tpu.memory_space<vmem>>, %arg11: memref<2x32xf32, #tpu.memory_space<vmem>>, %arg12: memref<2x32xf32, #tpu.memory_space<vmem>>) attributes {dimension_semantics = [], scalar_prefetch = 0 : i64, scratch_operands = 0 : i64, tpu.core_type = #tpu.core_type<tc>} {
    %c0 = arith.constant 0 : index
    %c0_0 = arith.constant 0 : index
    %0 = vector.load %arg0[%c0, %c0_0] : memref<16x2xf32, #tpu.memory_space<vmem>>, vector<16x2xf32>
    %c0_1 = arith.constant 0 : index
    %c0_2 = arith.constant 0 : index
    %1 = vector.load %arg1[%c0_1, %c0_2] : memref<2x128xf32, #tpu.memory_space<vmem>>, vector<2x128xf32>
    %cst = arith.constant dense<0.000000e+00> : vector<16x128xf32>
    %2 = tpu.matmul %0, %1, %cst {dimension_numbers = #tpu.dot_dimension_numbers<[1], [0], [0], [1], [0, 0, 1, 1], [], []>} : vector<16x2xf32>, vector<2x128xf32>, vector<16x128xf32> -> vector<16x128xf32>
    %c0_3 = arith.constant 0 : index
    %c0_4 = arith.constant 0 : index
    %3 = vector.load %arg3[%c0_3, %c0_4] : memref<1x128xf32, #tpu.memory_space<vmem>>, vector<1x128xf32>
    %4 = vector.broadcast %3 : vector<1x128xf32> to vector<16x128xf32>
    %5 = arith.addf %2, %4 : vector<16x128xf32>
    %c0_5 = arith.constant 0 : index
    %c0_6 = arith.constant 0 : index
    %6 = vector.load %arg2[%c0_5, %c0_6] : memref<32x128xf32, #tpu.memory_space<vmem>>, vector<32x128xf32>
    %c0_7 = arith.constant 0 : index
    %c0_8 = arith.constant 0 : index
    %7 = vector.load %arg4[%c0_7, %c0_8] : memref<2x32xf32, #tpu.memory_space<vmem>>, vector<2x32xf32>
    %c0_9 = arith.constant 0 : index
    %c0_10 = arith.constant 0 : index
    %8 = vector.load %arg5[%c0_9, %c0_10] : memref<2x32xf32, #tpu.memory_space<vmem>>, vector<2x32xf32>
    %9 = vector.extract_strided_slice %5 {offsets = [0, 0], sizes = [2, 128], strides = [1, 1]} : vector<16x128xf32> to vector<2x128xf32>
    %cst_11 = arith.constant dense<0.000000e+00> : vector<2x128xf32>
    %10 = tpu.matmul %7, %6, %cst_11 {dimension_numbers = #tpu.dot_dimension_numbers<[1], [0], [0], [1], [0, 0, 1, 1], [], []>} : vector<2x32xf32>, vector<32x128xf32>, vector<2x128xf32> -> vector<2x128xf32>
    %11 = arith.addf %9, %10 : vector<2x128xf32>
    %12 = arith.negf %11 : vector<2x128xf32>
    %13 = math.exp %12 : vector<2x128xf32>
    %cst_12 = arith.constant 1.000000e+00 : f32
    %14 = vector.broadcast %cst_12 : f32 to vector<2x128xf32>
    %15 = arith.addf %14, %13 : vector<2x128xf32>
    %16 = arith.divf %14, %15 : vector<2x128xf32>
    %17 = math.tanh %11 : vector<2x128xf32>
    %18 = vector.extract_strided_slice %16 {offsets = [0, 0], sizes = [2, 32], strides = [1, 1]} : vector<2x128xf32> to vector<2x32xf32>
    %19 = vector.extract_strided_slice %16 {offsets = [0, 32], sizes = [2, 32], strides = [1, 1]} : vector<2x128xf32> to vector<2x32xf32>
    %20 = vector.extract_strided_slice %17 {offsets = [0, 64], sizes = [2, 32], strides = [1, 1]} : vector<2x128xf32> to vector<2x32xf32>
    %21 = vector.extract_strided_slice %16 {offsets = [0, 96], sizes = [2, 32], strides = [1, 1]} : vector<2x128xf32> to vector<2x32xf32>
    %22 = arith.mulf %19, %8 : vector<2x32xf32>
    %23 = arith.mulf %18, %20 : vector<2x32xf32>
    %24 = arith.addf %22, %23 : vector<2x32xf32>
    %25 = math.tanh %24 : vector<2x32xf32>
    %26 = arith.mulf %21, %25 : vector<2x32xf32>
    %27 = vector.extract_strided_slice %5 {offsets = [2, 0], sizes = [2, 128], strides = [1, 1]} : vector<16x128xf32> to vector<2x128xf32>
    %cst_13 = arith.constant dense<0.000000e+00> : vector<2x128xf32>
    %28 = tpu.matmul %26, %6, %cst_13 {dimension_numbers = #tpu.dot_dimension_numbers<[1], [0], [0], [1], [0, 0, 1, 1], [], []>} : vector<2x32xf32>, vector<32x128xf32>, vector<2x128xf32> -> vector<2x128xf32>
    %29 = arith.addf %27, %28 : vector<2x128xf32>
    %30 = arith.negf %29 : vector<2x128xf32>
    %31 = math.exp %30 : vector<2x128xf32>
    %cst_14 = arith.constant 1.000000e+00 : f32
    %32 = vector.broadcast %cst_14 : f32 to vector<2x128xf32>
    %33 = arith.addf %32, %31 : vector<2x128xf32>
    %34 = arith.divf %32, %33 : vector<2x128xf32>
    %35 = math.tanh %29 : vector<2x128xf32>
    %36 = vector.extract_strided_slice %34 {offsets = [0, 0], sizes = [2, 32], strides = [1, 1]} : vector<2x128xf32> to vector<2x32xf32>
    %37 = vector.extract_strided_slice %34 {offsets = [0, 32], sizes = [2, 32], strides = [1, 1]} : vector<2x128xf32> to vector<2x32xf32>
    %38 = vector.extract_strided_slice %35 {offsets = [0, 64], sizes = [2, 32], strides = [1, 1]} : vector<2x128xf32> to vector<2x32xf32>
    %39 = vector.extract_strided_slice %34 {offsets = [0, 96], sizes = [2, 32], strides = [1, 1]} : vector<2x128xf32> to vector<2x32xf32>
    %40 = arith.mulf %37, %24 : vector<2x32xf32>
    %41 = arith.mulf %36, %38 : vector<2x32xf32>
    %42 = arith.addf %40, %41 : vector<2x32xf32>
    %43 = math.tanh %42 : vector<2x32xf32>
    %44 = arith.mulf %39, %43 : vector<2x32xf32>
    %45 = vector.extract_strided_slice %5 {offsets = [4, 0], sizes = [2, 128], strides = [1, 1]} : vector<16x128xf32> to vector<2x128xf32>
    %cst_15 = arith.constant dense<0.000000e+00> : vector<2x128xf32>
    %46 = tpu.matmul %44, %6, %cst_15 {dimension_numbers = #tpu.dot_dimension_numbers<[1], [0], [0], [1], [0, 0, 1, 1], [], []>} : vector<2x32xf32>, vector<32x128xf32>, vector<2x128xf32> -> vector<2x128xf32>
    %47 = arith.addf %45, %46 : vector<2x128xf32>
    %48 = arith.negf %47 : vector<2x128xf32>
    %49 = math.exp %48 : vector<2x128xf32>
    %cst_16 = arith.constant 1.000000e+00 : f32
    %50 = vector.broadcast %cst_16 : f32 to vector<2x128xf32>
    %51 = arith.addf %50, %49 : vector<2x128xf32>
    %52 = arith.divf %50, %51 : vector<2x128xf32>
    %53 = math.tanh %47 : vector<2x128xf32>
    %54 = vector.extract_strided_slice %52 {offsets = [0, 0], sizes = [2, 32], strides = [1, 1]} : vector<2x128xf32> to vector<2x32xf32>
    %55 = vector.extract_strided_slice %52 {offsets = [0, 32], sizes = [2, 32], strides = [1, 1]} : vector<2x128xf32> to vector<2x32xf32>
    %56 = vector.extract_strided_slice %53 {offsets = [0, 64], sizes = [2, 32], strides = [1, 1]} : vector<2x128xf32> to vector<2x32xf32>
    %57 = vector.extract_strided_slice %52 {offsets = [0, 96], sizes = [2, 32], strides = [1, 1]} : vector<2x128xf32> to vector<2x32xf32>
    %58 = arith.mulf %55, %42 : vector<2x32xf32>
    %59 = arith.mulf %54, %56 : vector<2x32xf32>
    %60 = arith.addf %58, %59 : vector<2x32xf32>
    %61 = math.tanh %60 : vector<2x32xf32>
    %62 = arith.mulf %57, %61 : vector<2x32xf32>
    %63 = vector.extract_strided_slice %5 {offsets = [6, 0], sizes = [2, 128], strides = [1, 1]} : vector<16x128xf32> to vector<2x128xf32>
    %cst_17 = arith.constant dense<0.000000e+00> : vector<2x128xf32>
    %64 = tpu.matmul %62, %6, %cst_17 {dimension_numbers = #tpu.dot_dimension_numbers<[1], [0], [0], [1], [0, 0, 1, 1], [], []>} : vector<2x32xf32>, vector<32x128xf32>, vector<2x128xf32> -> vector<2x128xf32>
    %65 = arith.addf %63, %64 : vector<2x128xf32>
    %66 = arith.negf %65 : vector<2x128xf32>
    %67 = math.exp %66 : vector<2x128xf32>
    %cst_18 = arith.constant 1.000000e+00 : f32
    %68 = vector.broadcast %cst_18 : f32 to vector<2x128xf32>
    %69 = arith.addf %68, %67 : vector<2x128xf32>
    %70 = arith.divf %68, %69 : vector<2x128xf32>
    %71 = math.tanh %65 : vector<2x128xf32>
    %72 = vector.extract_strided_slice %70 {offsets = [0, 0], sizes = [2, 32], strides = [1, 1]} : vector<2x128xf32> to vector<2x32xf32>
    %73 = vector.extract_strided_slice %70 {offsets = [0, 32], sizes = [2, 32], strides = [1, 1]} : vector<2x128xf32> to vector<2x32xf32>
    %74 = vector.extract_strided_slice %71 {offsets = [0, 64], sizes = [2, 32], strides = [1, 1]} : vector<2x128xf32> to vector<2x32xf32>
    %75 = vector.extract_strided_slice %70 {offsets = [0, 96], sizes = [2, 32], strides = [1, 1]} : vector<2x128xf32> to vector<2x32xf32>
    %76 = arith.mulf %73, %60 : vector<2x32xf32>
    %77 = arith.mulf %72, %74 : vector<2x32xf32>
    %78 = arith.addf %76, %77 : vector<2x32xf32>
    %79 = math.tanh %78 : vector<2x32xf32>
    %80 = arith.mulf %75, %79 : vector<2x32xf32>
    %81 = vector.extract_strided_slice %5 {offsets = [8, 0], sizes = [2, 128], strides = [1, 1]} : vector<16x128xf32> to vector<2x128xf32>
    %cst_19 = arith.constant dense<0.000000e+00> : vector<2x128xf32>
    %82 = tpu.matmul %80, %6, %cst_19 {dimension_numbers = #tpu.dot_dimension_numbers<[1], [0], [0], [1], [0, 0, 1, 1], [], []>} : vector<2x32xf32>, vector<32x128xf32>, vector<2x128xf32> -> vector<2x128xf32>
    %83 = arith.addf %81, %82 : vector<2x128xf32>
    %84 = arith.negf %83 : vector<2x128xf32>
    %85 = math.exp %84 : vector<2x128xf32>
    %cst_20 = arith.constant 1.000000e+00 : f32
    %86 = vector.broadcast %cst_20 : f32 to vector<2x128xf32>
    %87 = arith.addf %86, %85 : vector<2x128xf32>
    %88 = arith.divf %86, %87 : vector<2x128xf32>
    %89 = math.tanh %83 : vector<2x128xf32>
    %90 = vector.extract_strided_slice %88 {offsets = [0, 0], sizes = [2, 32], strides = [1, 1]} : vector<2x128xf32> to vector<2x32xf32>
    %91 = vector.extract_strided_slice %88 {offsets = [0, 32], sizes = [2, 32], strides = [1, 1]} : vector<2x128xf32> to vector<2x32xf32>
    %92 = vector.extract_strided_slice %89 {offsets = [0, 64], sizes = [2, 32], strides = [1, 1]} : vector<2x128xf32> to vector<2x32xf32>
    %93 = vector.extract_strided_slice %88 {offsets = [0, 96], sizes = [2, 32], strides = [1, 1]} : vector<2x128xf32> to vector<2x32xf32>
    %94 = arith.mulf %91, %78 : vector<2x32xf32>
    %95 = arith.mulf %90, %92 : vector<2x32xf32>
    %96 = arith.addf %94, %95 : vector<2x32xf32>
    %97 = math.tanh %96 : vector<2x32xf32>
    %98 = arith.mulf %93, %97 : vector<2x32xf32>
    %99 = vector.extract_strided_slice %5 {offsets = [10, 0], sizes = [2, 128], strides = [1, 1]} : vector<16x128xf32> to vector<2x128xf32>
    %cst_21 = arith.constant dense<0.000000e+00> : vector<2x128xf32>
    %100 = tpu.matmul %98, %6, %cst_21 {dimension_numbers = #tpu.dot_dimension_numbers<[1], [0], [0], [1], [0, 0, 1, 1], [], []>} : vector<2x32xf32>, vector<32x128xf32>, vector<2x128xf32> -> vector<2x128xf32>
    %101 = arith.addf %99, %100 : vector<2x128xf32>
    %102 = arith.negf %101 : vector<2x128xf32>
    %103 = math.exp %102 : vector<2x128xf32>
    %cst_22 = arith.constant 1.000000e+00 : f32
    %104 = vector.broadcast %cst_22 : f32 to vector<2x128xf32>
    %105 = arith.addf %104, %103 : vector<2x128xf32>
    %106 = arith.divf %104, %105 : vector<2x128xf32>
    %107 = math.tanh %101 : vector<2x128xf32>
    %108 = vector.extract_strided_slice %106 {offsets = [0, 0], sizes = [2, 32], strides = [1, 1]} : vector<2x128xf32> to vector<2x32xf32>
    %109 = vector.extract_strided_slice %106 {offsets = [0, 32], sizes = [2, 32], strides = [1, 1]} : vector<2x128xf32> to vector<2x32xf32>
    %110 = vector.extract_strided_slice %107 {offsets = [0, 64], sizes = [2, 32], strides = [1, 1]} : vector<2x128xf32> to vector<2x32xf32>
    %111 = vector.extract_strided_slice %106 {offsets = [0, 96], sizes = [2, 32], strides = [1, 1]} : vector<2x128xf32> to vector<2x32xf32>
    %112 = arith.mulf %109, %96 : vector<2x32xf32>
    %113 = arith.mulf %108, %110 : vector<2x32xf32>
    %114 = arith.addf %112, %113 : vector<2x32xf32>
    %115 = math.tanh %114 : vector<2x32xf32>
    %116 = arith.mulf %111, %115 : vector<2x32xf32>
    %117 = vector.extract_strided_slice %5 {offsets = [12, 0], sizes = [2, 128], strides = [1, 1]} : vector<16x128xf32> to vector<2x128xf32>
    %cst_23 = arith.constant dense<0.000000e+00> : vector<2x128xf32>
    %118 = tpu.matmul %116, %6, %cst_23 {dimension_numbers = #tpu.dot_dimension_numbers<[1], [0], [0], [1], [0, 0, 1, 1], [], []>} : vector<2x32xf32>, vector<32x128xf32>, vector<2x128xf32> -> vector<2x128xf32>
    %119 = arith.addf %117, %118 : vector<2x128xf32>
    %120 = arith.negf %119 : vector<2x128xf32>
    %121 = math.exp %120 : vector<2x128xf32>
    %cst_24 = arith.constant 1.000000e+00 : f32
    %122 = vector.broadcast %cst_24 : f32 to vector<2x128xf32>
    %123 = arith.addf %122, %121 : vector<2x128xf32>
    %124 = arith.divf %122, %123 : vector<2x128xf32>
    %125 = math.tanh %119 : vector<2x128xf32>
    %126 = vector.extract_strided_slice %124 {offsets = [0, 0], sizes = [2, 32], strides = [1, 1]} : vector<2x128xf32> to vector<2x32xf32>
    %127 = vector.extract_strided_slice %124 {offsets = [0, 32], sizes = [2, 32], strides = [1, 1]} : vector<2x128xf32> to vector<2x32xf32>
    %128 = vector.extract_strided_slice %125 {offsets = [0, 64], sizes = [2, 32], strides = [1, 1]} : vector<2x128xf32> to vector<2x32xf32>
    %129 = vector.extract_strided_slice %124 {offsets = [0, 96], sizes = [2, 32], strides = [1, 1]} : vector<2x128xf32> to vector<2x32xf32>
    %130 = arith.mulf %127, %114 : vector<2x32xf32>
    %131 = arith.mulf %126, %128 : vector<2x32xf32>
    %132 = arith.addf %130, %131 : vector<2x32xf32>
    %133 = math.tanh %132 : vector<2x32xf32>
    %134 = arith.mulf %129, %133 : vector<2x32xf32>
    %135 = vector.extract_strided_slice %5 {offsets = [14, 0], sizes = [2, 128], strides = [1, 1]} : vector<16x128xf32> to vector<2x128xf32>
    %cst_25 = arith.constant dense<0.000000e+00> : vector<2x128xf32>
    %136 = tpu.matmul %134, %6, %cst_25 {dimension_numbers = #tpu.dot_dimension_numbers<[1], [0], [0], [1], [0, 0, 1, 1], [], []>} : vector<2x32xf32>, vector<32x128xf32>, vector<2x128xf32> -> vector<2x128xf32>
    %137 = arith.addf %135, %136 : vector<2x128xf32>
    %138 = arith.negf %137 : vector<2x128xf32>
    %139 = math.exp %138 : vector<2x128xf32>
    %cst_26 = arith.constant 1.000000e+00 : f32
    %140 = vector.broadcast %cst_26 : f32 to vector<2x128xf32>
    %141 = arith.addf %140, %139 : vector<2x128xf32>
    %142 = arith.divf %140, %141 : vector<2x128xf32>
    %143 = math.tanh %137 : vector<2x128xf32>
    %144 = vector.extract_strided_slice %142 {offsets = [0, 0], sizes = [2, 32], strides = [1, 1]} : vector<2x128xf32> to vector<2x32xf32>
    %145 = vector.extract_strided_slice %142 {offsets = [0, 32], sizes = [2, 32], strides = [1, 1]} : vector<2x128xf32> to vector<2x32xf32>
    %146 = vector.extract_strided_slice %143 {offsets = [0, 64], sizes = [2, 32], strides = [1, 1]} : vector<2x128xf32> to vector<2x32xf32>
    %147 = vector.extract_strided_slice %142 {offsets = [0, 96], sizes = [2, 32], strides = [1, 1]} : vector<2x128xf32> to vector<2x32xf32>
    %148 = arith.mulf %145, %132 : vector<2x32xf32>
    %149 = arith.mulf %144, %146 : vector<2x32xf32>
    %150 = arith.addf %148, %149 : vector<2x32xf32>
    %151 = math.tanh %150 : vector<2x32xf32>
    %152 = arith.mulf %147, %151 : vector<2x32xf32>
    %153 = tpu.concatenate %26, %44, %62, %80, %98, %116, %134, %152 in 0 : vector<2x32xf32>, vector<2x32xf32>, vector<2x32xf32>, vector<2x32xf32>, vector<2x32xf32>, vector<2x32xf32>, vector<2x32xf32>, vector<2x32xf32> -> vector<16x32xf32>
    %c0_27 = arith.constant 0 : index
    %c0_28 = arith.constant 0 : index
    %154 = vector.load %arg6[%c0_27, %c0_28] : memref<32x32xf32, #tpu.memory_space<vmem>>, vector<32x32xf32>
    %cst_29 = arith.constant dense<0.000000e+00> : vector<16x32xf32>
    %155 = tpu.matmul %153, %154, %cst_29 {dimension_numbers = #tpu.dot_dimension_numbers<[1], [0], [0], [1], [0, 0, 1, 1], [], []>} : vector<16x32xf32>, vector<32x32xf32>, vector<16x32xf32> -> vector<16x32xf32>
    %c0_30 = arith.constant 0 : index
    %c0_31 = arith.constant 0 : index
    %156 = vector.load %arg7[%c0_30, %c0_31] : memref<1x32xf32, #tpu.memory_space<vmem>>, vector<1x32xf32>
    %157 = vector.broadcast %156 : vector<1x32xf32> to vector<16x32xf32>
    %158 = arith.addf %155, %157 : vector<16x32xf32>
    %cst_32 = arith.constant 0.000000e+00 : f32
    %159 = vector.broadcast %cst_32 : f32 to vector<16x32xf32>
    %160 = arith.maximumf %158, %159 : vector<16x32xf32>
    %c0_33 = arith.constant 0 : index
    %c0_34 = arith.constant 0 : index
    %161 = vector.load %arg8[%c0_33, %c0_34] : memref<32x1xf32, #tpu.memory_space<vmem>>, vector<32x1xf32>
    %cst_35 = arith.constant dense<0.000000e+00> : vector<16x1xf32>
    %162 = tpu.matmul %160, %161, %cst_35 {dimension_numbers = #tpu.dot_dimension_numbers<[1], [0], [0], [1], [0, 0, 1, 1], [], []>} : vector<16x32xf32>, vector<32x1xf32>, vector<16x1xf32> -> vector<16x1xf32>
    %c0_36 = arith.constant 0 : index
    %163 = memref.load %arg9[%c0_36] : memref<1xf32, #tpu.memory_space<smem>>
    %164 = vector.broadcast %163 : f32 to vector<16x1xf32>
    %165 = arith.addf %162, %164 : vector<16x1xf32>
    %c0_37 = arith.constant 0 : index
    %c0_38 = arith.constant 0 : index
    %166 = vector.load %arg10[%c0_37, %c0_38] : memref<16x1xf32, #tpu.memory_space<vmem>>, vector<16x1xf32>
    tpu.vector_store %arg10[%c0_37, %c0_38], %165 {strides = array<i32>} : memref<16x1xf32, #tpu.memory_space<vmem>>, vector<16x1xf32>,
    %c0_39 = arith.constant 0 : index
    %c0_40 = arith.constant 0 : index
    %167 = vector.load %arg11[%c0_39, %c0_40] : memref<2x32xf32, #tpu.memory_space<vmem>>, vector<2x32xf32>
    tpu.vector_store %arg11[%c0_39, %c0_40], %152 {strides = array<i32>} : memref<2x32xf32, #tpu.memory_space<vmem>>, vector<2x32xf32>,
    %c0_41 = arith.constant 0 : index
    %c0_42 = arith.constant 0 : index
    %168 = vector.load %arg12[%c0_41, %c0_42] : memref<2x32xf32, #tpu.memory_space<vmem>>, vector<2x32xf32>
    tpu.vector_store %arg12[%c0_41, %c0_42], %150 {strides = array<i32>} : memref<2x32xf32, #tpu.memory_space<vmem>>, vector<2x32xf32>,
    return
  }
}

</mosaic_0001>

<bundles_post_ra>
// kernel: tpu_custom_call.1
= control target key start
LH: loop header
LB: loop body
LE: loop exit
PB: predicated region body
PF: predicated region fallthrough
CT: control target
= control target key end

     0   :  { %19 = vsyncpa [#allocation4], 0  ;;  %s1949_s0 = inlined_call_operand.vmem [shape: f32[16,2], index: 0, kind: input, shape index: {}]   ;;  %s1950_s1 = inlined_call_operand.vmem [shape: f32[2,128], index: 1, kind: input, shape index: {}]   ;;  %s1951_s2 = inlined_call_operand.vmem [shape: f32[32,128], index: 2, kind: input, shape index: {}]   ;;  %s1952_s3 = inlined_call_operand.hbm [shape: f32[1,128], index: 3, kind: input, shape index: {}]   ;;  %s1953_s4 = inlined_call_operand.vmem [shape: f32[2,32], index: 4, kind: input, shape index: {}]   ;;  %s1954_s5 = inlined_call_operand.vmem [shape: f32[2,32], index: 5, kind: input, shape index: {}]   ;;  %s1955_s6 = inlined_call_operand.vmem [shape: f32[32,32], index: 6, kind: input, shape index: {}]   ;;  %s1956_s7 = inlined_call_operand.vmem [shape: f32[1,32], index: 7, kind: input, shape index: {}]   ;;  %s1957_s8 = inlined_call_operand.vmem [shape: f32[32,1], index: 8, kind: input, shape index: {}]   ;;  %s1958_s9 = inlined_call_operand.<no memory space> [shape: f32[1], index: 9, kind: input, shape index: {}]   ;;  %s1959_s10 = inlined_call_operand.vmem [shape: f32[16,1], index: 10, kind: output, shape index: {0}]   ;;  %s1960_s11 = inlined_call_operand.hbm [shape: f32[2,32], index: 11, kind: output, shape index: {1}]   ;;  %s1961_s12 = inlined_call_operand.hbm [shape: f32[2,32], index: 12, kind: output, shape index: {2}]  }
   0x1   :  { %20 = vsyncpa [#allocation5], 0 }
   0x2   :  { %21 = vsyncpa [#allocation8], 0  ;;  %s1646_s21 = smov [#allocation3]   ;;  %s1574_s25 = scalar_lea.hbm %s1952_s3, 16 }
   0x3   :  { %s34_s22 = sshll.u32 %s1646_s21, 4  ;;  %p1575_p0 = scmp.ne.s32.totalorder %s1952_s3, %s1574_s25  ;;  %s35_s22 = int_to_ptr.vmem [resolvable:$true] %s34_s22 }
   0x4   :  { %p1578_p1 = scmp.lt.u32.totalorder %s1574_s25, %s1952_s3 }
   0x6   :  { %p1580_p2 = pnand %p1578_p1, %p1575_p0 }
   0x8   :  { %1583 = shalt.err (!%p1580_p2)
}
   0x9   :  { %s1584_s30 = scalar_lea.vmem %s35_s22, 16  ;;  %s1588_s13 = scalar_lea.vmem %s35_s22, 32 }
   0xa   :  { %p1585_p3 = scmp.ne.s32.totalorder %s35_s22, %s1584_s30  ;;  %p1589_p4 = scmp.lt.s32.totalorder %s35_s22, %s35_s22 }
   0xb   :  { %p1590_p5 = scmp.lt.s32.totalorder %s1588_s13, %s1584_s30 }
   0xd   :  { %p1591_p6 = por %p1590_p5, %p1589_p4 }
   0xf   :  { %p1592_p7 = pnand %p1591_p6, %p1585_p3 }
  0x11   :  { %1595 = shalt.err (!%p1592_p7)
}
  0x12   :  { %37 = dma.hbm_to_vmem [thread:$0]  %s1952_s3, 16, %s35_s22, [#allocation4]  }
  0x13   :  { %1640 = dma.done.wait [#allocation4], 16  }
  0x14   :  { %1641 = vsyncadd [#allocation4], 4294967280  ;;  %v1647_v0 = vmov 0.0|0.0   ;;  %vm1648_vm0 = vmmov 0   ;;  %v1649_v1 = vmov 0.0   ;;  %vm70_vm1 = vcmask 1041408  }
  0x15   :  { %1437 = vmatprep.subr.bf16.mxu1 %v1647_v0  ;;  %1335 = vmatprep.mubr.msk.f32.mxu1 %vm1648_vm0, %v1649_v1  ;;  %vm63_vm2 = vcmask 15360   ;;  %v149_v2 = vld [vmem:[%s1951_s2] sm:$0xff]  ;;  %v150_v3 = vld [vmem:[%s1951_s2 + $0x8] sm:$0xff]  ;;  %v151_v8 = vld [vmem:[%s1951_s2 + $0x10] sm:$0xff]  ;;  %vm155_vm3 = vcmask 261120   ;;  %s1651_s30 = smov 32  }
  0x16   :  { %v55_v4 = vld [vmem:[%s1950_s1] sm:$0x3]  ;;  %v1744_v5 = vpack.c.bf16 %v150_v3, %v149_v2  ;;  %v54_v7 = vld [vmem:[%s1949_s0 + $0x8] sm:$0xff]  ;;  %v152_v9 = vld [vmem:[%s1951_s2 + $0x18] sm:$0xff]  ;;  %vm1003_vm4 = vcmask 1043456   ;;  %vm1005_vm5 = vcmask 1045504  }
  0x17   :  { %1322 = vmatprep.subr.msk.mxu0 %vm70_vm1, %v55_v4  ;;  %v53_v6 = vld [vmem:[%s1949_s0] sm:$0xff]  ;;  %v1761_v10 = vpack.c.bf16 %v152_v9, %v151_v8  ;;  %vm1202_vm6 = vcmask 261126   ;;  %s1653_s0 = smov [#allocation6]  }
  0x18   :  { %1323 = vmatpush3.msk.msra.mxu0 %vm70_vm1, %v55_v4  ;;  %1324 = vmatprep.mubr.msk.f32.mxu0 %vm63_vm2, %v53_v6  ;;  %v153_v11 = vld [vmem:[%s1953_s4] sm:$0x3]  ;;  %s1650_s4 = smov 64   ;;  %s1217_s2 = sshll.u32 %s1653_s0, 4  ;;  %s1218_s2 = int_to_ptr.vmem [resolvable:$true] %s1217_s2 }
  0x19   :  { %1439 = vmatpush3.bf16.msra.mxu1 %v1744_v5  ;;  %1325 = vmatmul.mubr.msk.f32.vlgmr.msra.gmra.mrb[0].mxu0 %vm63_vm2, %v54_v7  ;;  %v1242_v12 = vld [vmem:[#allocation3] ss:$0 sm:$0xff]  ;;  %s1596_s28 = scalar_lea.vmem %s1218_s2, 32  ;;  %p1601_p9 = scmp.lt.s32.totalorder %s1218_s2, %s1218_s2 }
  0x1a   :  { %1440 = vmatprep.subr.bf16.mxu1 %v1647_v0  ;;  %1443 = vmatprep.subr.bf16.mxu0 %v1647_v0  ;;  %v154_v21 = vld [vmem:[%s1954_s5] sm:$0x3]  ;;  %p1597_p8 = scmp.ne.s32.totalorder %s1218_s2, %s1596_s28  ;;  %p1602_p10 = scmp.lt.s32.totalorder %s1596_s28, %s1596_s28 }
  0x1b   :  { %1445 = vmatpush3.bf16.msra.mxu0 %v1744_v5  ;;  %1346 = vmatprep.mubr.msk.f32.mxu0 %vm1648_vm0, %v1649_v1 }
  0x1c   :  { %1446 = vmatprep.subr.bf16.mxu0 %v1647_v0  ;;  %p1603_p11 = por %p1602_p10, %p1601_p9 }
  0x1d   :  { %1442 = vmatpush3.bf16.msra.mxu1 %v1761_v10 }
  0x1e   :  { %1449 = vmatprep.subr.bf16.mxu1 %v1647_v0  ;;  %p1604_p12 = pnand %p1603_p11, %p1597_p8 }
  0x1f   :  { %1448 = vmatpush3.bf16.msra.mxu0 %v1761_v10 }
  0x20   :  { %1336 = vmatmul.mubr.msk.f32.vlgmr.msra.gmra.mrb[0].mxu1 %vm155_vm3, %v153_v11  ;;  %1455 = vmatprep.subr.bf16.mxu0 %v1647_v0 }
  0x21   :  { %1451 = vmatpush3.bf16.msra.mxu1 %v1744_v5  ;;  %1357 = vmatprep.mubr.msk.f32.mxu1 %vm1648_vm0, %v1649_v1 }
  0x22   :  { %1452 = vmatprep.subr.bf16.mxu1 %v1647_v0 }
  0x25   :  { %1454 = vmatpush3.bf16.msra.mxu1 %v1761_v10 }
  0x26   :  { %1461 = vmatprep.subr.bf16.mxu1 %v1647_v0 }
  0xec   :  { %v1326_v13 = vpop.f32.mrb[0].mxu0 }
  0xed   :  { %v1783_v14 = vadd.f32 %v1326_v13, %v1242_v12  ;;  %v140_v15 = vpop.f32.mrb[1].mxu0 }
  0xee   :  { %v1785_v16 = vadd.f32 %v1242_v12, %v140_v15 }
  0xf3   :  { %v225_v17 = vpop.f32.mrb[0].mxu1 }
  0xf4   :  { %v229_v18 = vadd.f32 %v225_v17, %v1785_v16  ;;  %v1337_v19 = vpop.f32.mrb[1].mxu1 }
  0xf6   :  { %1510 = vtanh.f32 %v229_v18  ;;  %v1247_v22 = vmul.f32 -1.442695, %v229_v18 }
  0xf8   :  { %1512 = vpow2.f32 %v1247_v22 }
 0x100   :  { %v1511_v20 = vpop.eup %1510 }
 0x101   :  { %243 = vrot.lane.b32.xlu0 %v1511_v20, %s1650_s4 }
 0x102   :  { %v1513_v23 = vpop.eup %1512 }
 0x103   :  { %v233_v24 = vadd.f32 1.0, %v1513_v23 }
 0x105   :  { %238 = vrot.lane.b32.xlu0 %v154_v21, %s1651_s30  ;;  %1514 = vrcp.f32 %v233_v24 }
 0x10f   :  { %v1515_v25 = vpop.eup %1514 }
 0x173   :  { %v244_v26 = vpop.permute.xlu0 %243 }
 0x174   :  { %v246_v27 = vmul.f32 %v1515_v25, %v244_v26 }
 0x176   :  { %248 = vrot.lane.b32.xlu1 %v246_v27, %s1651_s30 }
 0x177   :  { %v239_v28 = vpop.permute.xlu0 %238 }
 0x178   :  { %v241_v29 = vmul.f32 %v1515_v25, %v239_v28 }
 0x1e8   :  { %v249_v30 = vpop.permute.xlu1 %248 }
 0x1e9   :  { %v251_v31 = vadd.f32 %v249_v30, %v241_v29 }
 0x1eb   :  { %1516 = vtanh.f32 %v251_v31  ;;  %v345_v47 = vrot.slane %v251_v31, 6 }
 0x1f5   :  { %v1517_v32 = vpop.eup %1516 }
 0x1f6   :  { %254 = vrot.lane.b32.xlu1 %v1517_v32, %s1650_s4 }
 0x268   :  { %v255_v33 = vpop.permute.xlu1 %254 }
 0x269   :  { %v1795_v34 = vmul.f32 %v1515_v25, %v255_v33 }
 0x26b   :  { %259 = vrot.lane.b32.xlu0 %v1795_v34, %s1651_s30 }
 0x2dd   :  { %v260_v35 = vpop.permute.xlu0 %259 }
 0x2de   :  { %1347 = vmatmul.mubr.msk.f32.vlgmr.msra.gmra.mrb[2].mxu0 %vm155_vm3, %v260_v35 }
 0x2df   :  { %1457 = vmatpush3.bf16.msra.mxu0 %v1744_v5  ;;  %1368 = vmatprep.mubr.msk.f32.mxu0 %vm1648_vm0, %v1649_v1 }
 0x2e0   :  { %1458 = vmatprep.subr.bf16.mxu0 %v1647_v0 }
 0x2e3   :  { %1460 = vmatpush3.bf16.msra.mxu0 %v1761_v10 }
 0x2e4   :  { %1467 = vmatprep.subr.bf16.mxu0 %v1647_v0 }
 0x3b1   :  { %v329_v36 = vpop.f32.mrb[2].mxu0 }
 0x3b2   :  { %v334_v37 = vrot.slane %v329_v36, 6  ;;  %v1348_v38 = vpop.f32.mrb[3].mxu0 }
 0x3b4   :  { %v336_v39 = vadd.f32 %v334_v37, %v1785_v16 }
 0x3b6   :  { %1518 = vtanh.f32 %v336_v39  ;;  %v1249_v41 = vmul.f32 -1.442695, %v336_v39 }
 0x3b8   :  { %1520 = vpow2.f32 %v1249_v41 }
 0x3c0   :  { %v1519_v40 = vpop.eup %1518 }
 0x3c1   :  { %349 = vrot.lane.b32.xlu1 %v1519_v40, %s1650_s4 }
 0x3c2   :  { %v1521_v42 = vpop.eup %1520 }
 0x3c3   :  { %v340_v43 = vadd.f32 1.0, %v1521_v42 }
 0x3c5   :  { %1522 = vrcp.f32 %v340_v43 }
 0x3cf   :  { %v1523_v44 = vpop.eup %1522 }
 0x3d0   :  { %v347_v48 = vmul.f32 %v1523_v44, %v345_v47 }
 0x433   :  { %v350_v45 = vpop.permute.xlu1 %349 }
 0x434   :  { %v352_v46 = vmul.f32 %v1523_v44, %v350_v45 }
 0x436   :  { %354 = vrot.lane.b32.xlu0 %v352_v46, %s1651_s30 }
 0x4a8   :  { %v355_v49 = vpop.permute.xlu0 %354 }
 0x4a9   :  { %v357_v50 = vadd.f32 %v355_v49, %v347_v48 }
 0x4ab   :  { %1524 = vtanh.f32 %v357_v50  ;;  %v452_v6 = vrot.slane %v357_v50, 6 }
 0x4b5   :  { %v1525_v51 = vpop.eup %1524 }
 0x4b6   :  { %360 = vrot.lane.b32.xlu1 %v1525_v51, %s1650_s4 }
 0x528   :  { %v361_v52 = vpop.permute.xlu1 %360 }
 0x529   :  { %v363_v53 = vmul.f32 %v1523_v44, %v361_v52 }
 0x52b   :  { %v365_v54 = vrot.slane %v363_v53, 2  ;;  %v1002_v15 = vsel %vm70_vm1, %v1795_v34, %v363_v53 }
 0x52d   :  { %366 = vrot.lane.b32.xlu0 %v365_v54, %s1651_s30 }
 0x59f   :  { %v367_v55 = vpop.permute.xlu0 %366 }
 0x5a0   :  { %1358 = vmatmul.mubr.msk.f32.vlgmr.msra.gmra.mrb[2].mxu1 %vm155_vm3, %v367_v55 }
 0x5a1   :  { %1463 = vmatpush3.bf16.msra.mxu1 %v1744_v5  ;;  %1379 = vmatprep.mubr.msk.f32.mxu1 %vm1648_vm0, %v1649_v1 }
 0x5a2   :  { %1464 = vmatprep.subr.bf16.mxu1 %v1647_v0 }
 0x5a5   :  { %1466 = vmatpush3.bf16.msra.mxu1 %v1761_v10 }
 0x5a6   :  { %1473 = vmatprep.subr.bf16.mxu1 %v1647_v0 }
 0x673   :  { %v436_v56 = vpop.f32.mrb[2].mxu1 }
 0x674   :  { %v441_v57 = vrot.slane %v436_v56, 4  ;;  %v1359_v58 = vpop.f32.mrb[3].mxu1 }
 0x676   :  { %v443_v59 = vadd.f32 %v441_v57, %v1785_v16 }
 0x678   :  { %1526 = vtanh.f32 %v443_v59  ;;  %v1251_v61 = vmul.f32 -1.442695, %v443_v59 }
 0x67a   :  { %1528 = vpow2.f32 %v1251_v61 }
 0x682   :  { %v1527_v60 = vpop.eup %1526 }
 0x683   :  { %456 = vrot.lane.b32.xlu1 %v1527_v60, %s1650_s4 }
 0x684   :  { %v1529_v62 = vpop.eup %1528 }
 0x685   :  { %v447_v63 = vadd.f32 1.0, %v1529_v62 }
 0x687   :  { %1530 = vrcp.f32 %v447_v63 }
 0x691   :  { %v1531_v2 = vpop.eup %1530 }
 0x692   :  { %v454_v7 = vmul.f32 %v1531_v2, %v452_v6 }
 0x6f5   :  { %v457_v3 = vpop.permute.xlu1 %456 }
 0x6f6   :  { %v459_v4 = vmul.f32 %v1531_v2, %v457_v3 }
 0x6f8   :  { %461 = vrot.lane.b32.xlu0 %v459_v4, %s1651_s30 }
 0x76a   :  { %v462_v8 = vpop.permute.xlu0 %461 }
 0x76b   :  { %v464_v9 = vadd.f32 %v462_v8, %v454_v7 }
 0x76d   :  { %1532 = vtanh.f32 %v464_v9  ;;  %v559_v31 = vrot.slane %v464_v9, 6 }
 0x777   :  { %v1533_v11 = vpop.eup %1532 }
 0x778   :  { %467 = vrot.lane.b32.xlu1 %v1533_v11, %s1650_s4 }
 0x7ea   :  { %v468_v12 = vpop.permute.xlu1 %467 }
 0x7eb   :  { %v470_v13 = vmul.f32 %v1531_v2, %v468_v12 }
 0x7ed   :  { %v472_v17 = vrot.slane %v470_v13, 4  ;;  %v1004_v18 = vsel %vm1003_vm4, %v1002_v15, %v470_v13 }
 0x7ef   :  { %473 = vrot.lane.b32.xlu0 %v472_v17, %s1651_s30 }
 0x861   :  { %v474_v19 = vpop.permute.xlu0 %473 }
 0x862   :  { %1369 = vmatmul.mubr.msk.f32.vlgmr.msra.gmra.mrb[4].mxu0 %vm155_vm3, %v474_v19 }
 0x863   :  { %1469 = vmatpush3.bf16.msra.mxu0 %v1744_v5  ;;  %1390 = vmatprep.mubr.msk.f32.mxu0 %vm1648_vm0, %v1649_v1 }
 0x864   :  { %1470 = vmatprep.subr.bf16.mxu0 %v1647_v0 }
 0x867   :  { %1472 = vmatpush3.bf16.msra.mxu0 %v1761_v10 }
 0x868   :  { %1479 = vmatprep.subr.bf16.mxu0 %v1647_v0 }
 0x935   :  { %v543_v20 = vpop.f32.mrb[4].mxu0 }
 0x936   :  { %v548_v21 = vrot.slane %v543_v20, 2  ;;  %v1370_v22 = vpop.f32.mrb[5].mxu0 }
 0x938   :  { %v550_v23 = vadd.f32 %v548_v21, %v1785_v16 }
 0x93a   :  { %1534 = vtanh.f32 %v550_v23  ;;  %v1253_v25 = vmul.f32 -1.442695, %v550_v23 }
 0x93c   :  { %1536 = vpow2.f32 %v1253_v25 }
 0x944   :  { %v1535_v24 = vpop.eup %1534 }
 0x945   :  { %563 = vrot.lane.b32.xlu1 %v1535_v24, %s1650_s4 }
 0x946   :  { %v1537_v26 = vpop.eup %1536 }
 0x947   :  { %v554_v27 = vadd.f32 1.0, %v1537_v26 }
 0x949   :  { %1538 = vrcp.f32 %v554_v27 }
 0x953   :  { %v1539_v28 = vpop.eup %1538 }
 0x954   :  { %v561_v32 = vmul.f32 %v1539_v28, %v559_v31 }
 0x9b7   :  { %v564_v29 = vpop.permute.xlu1 %563 }
 0x9b8   :  { %v566_v30 = vmul.f32 %v1539_v28, %v564_v29 }
 0x9ba   :  { %568 = vrot.lane.b32.xlu0 %v566_v30, %s1651_s30 }
 0xa2c   :  { %v569_v33 = vpop.permute.xlu0 %568 }
 0xa2d   :  { %v571_v34 = vadd.f32 %v569_v33, %v561_v32 }
 0xa2f   :  { %1540 = vtanh.f32 %v571_v34  ;;  %v663_v50 = vrot.slane %v571_v34, 6 }
 0xa39   :  { %v1541_v16 = vpop.eup %1540 }
 0xa3a   :  { %574 = vrot.lane.b32.xlu1 %v1541_v16, %s1650_s4 }
 0xaac   :  { %v575_v35 = vpop.permute.xlu1 %574 }
 0xaad   :  { %v577_v36 = vmul.f32 %v1539_v28, %v575_v35 }
 0xaaf   :  { %v579_v37 = vrot.slane %v577_v36, 6  ;;  %v1838_v38 = vsel %vm1005_vm5, %v1004_v18, %v577_v36 }
 0xab1   :  { %580 = vrot.lane.b32.xlu0 %v579_v37, %s1651_s30 }
 0xb23   :  { %v581_v39 = vpop.permute.xlu0 %580 }
 0xb24   :  { %1380 = vmatmul.mubr.msk.f32.vlgmr.msra.gmra.mrb[4].mxu1 %vm155_vm3, %v581_v39 }
 0xb25   :  { %1475 = vmatpush3.bf16.msra.mxu1 %v1744_v5  ;;  %1401 = vmatprep.mubr.msk.f32.mxu1 %vm1648_vm0, %v1649_v1 }
 0xb26   :  { %1476 = vmatprep.subr.bf16.mxu1 %v1647_v0 }
 0xb29   :  { %1478 = vmatpush3.bf16.msra.mxu1 %v1761_v10 }
 0xbf7   :  { %v650_v40 = vpop.f32.mrb[4].mxu1 }
 0xbf8   :  { %v654_v41 = vadd.f32 %v650_v40, %v1783_v14  ;;  %v1381_v42 = vpop.f32.mrb[5].mxu1 }
 0xbfa   :  { %1542 = vtanh.f32 %v654_v41  ;;  %v1255_v44 = vmul.f32 -1.442695, %v654_v41 }
 0xbfc   :  { %1544 = vpow2.f32 %v1255_v44 }
 0xc04   :  { %v1543_v43 = vpop.eup %1542 }
 0xc05   :  { %667 = vrot.lane.b32.xlu1 %v1543_v43, %s1650_s4 }
 0xc06   :  { %v1545_v45 = vpop.eup %1544 }
 0xc07   :  { %v658_v46 = vadd.f32 1.0, %v1545_v45 }
 0xc09   :  { %1546 = vrcp.f32 %v658_v46 }
 0xc13   :  { %v1547_v47 = vpop.eup %1546 }
 0xc14   :  { %v665_v51 = vmul.f32 %v1547_v47, %v663_v50 }
 0xc77   :  { %v668_v48 = vpop.permute.xlu1 %667 }
 0xc78   :  { %v670_v49 = vmul.f32 %v1547_v47, %v668_v48 }
 0xc7a   :  { %672 = vrot.lane.b32.xlu0 %v670_v49, %s1651_s30 }
 0xcec   :  { %v673_v52 = vpop.permute.xlu0 %672 }
 0xced   :  { %v675_v53 = vadd.f32 %v673_v52, %v665_v51 }
 0xcef   :  { %1548 = vtanh.f32 %v675_v53 }
 0xcf9   :  { %v1549_v54 = vpop.eup %1548 }
 0xcfa   :  { %678 = vrot.lane.b32.xlu1 %v1549_v54, %s1650_s4  ;;  %v1011_v54 = vld [vmem:[%s1955_s6 + $0x8] sm:$0xff] }
 0xd6c   :  { %v679_v55 = vpop.permute.xlu1 %678 }
 0xd6d   :  { %v1851_v56 = vmul.f32 %v1547_v47, %v679_v55 }
 0xd6f   :  { %683 = vrot.lane.b32.xlu0 %v1851_v56, %s1651_s30 }
 0xde1   :  { %v684_v57 = vpop.permute.xlu0 %683 }
 0xde2   :  { %1391 = vmatmul.mubr.msk.f32.vlgmr.msra.gmra.mrb[6].mxu0 %vm155_vm3, %v684_v57 }
 0xde3   :  { %1481 = vmatpush3.bf16.msra.mxu0 %v1744_v5  ;;  %1412 = vmatprep.mubr.msk.f32.mxu0 %vm1648_vm0, %v1649_v1 }
 0xde4   :  { %1482 = vmatprep.subr.bf16.mxu0 %v1647_v0  ;;  %v769_v0 = vrot.slane %v675_v53, 6  ;;  %v1010_v53 = vld [vmem:[%s1955_s6] sm:$0xff] }
 0xde5   :  { %v1485_v55 = vpack.c.bf16 %v1011_v54, %v1010_v53 }
 0xde7   :  { %1484 = vmatpush3.bf16.msra.mxu0 %v1761_v10  ;;  %1486 = vmatprep.subr.bf16.mxu1 %v1485_v55 }
 0xeb5   :  { %v753_v58 = vpop.f32.mrb[6].mxu0 }
 0xeb6   :  { %v758_v59 = vrot.slane %v753_v58, 6  ;;  %v1392_v60 = vpop.f32.mrb[7].mxu0 }
 0xeb7   :  { %v1109_v60 = vld [vmem:[%s1957_s8 + $0x8] sm:$0xff] }
 0xeb8   :  { %v760_v61 = vadd.f32 %v758_v59, %v1783_v14  ;;  %v1108_v59 = vld [vmem:[%s1957_s8] sm:$0xff] }
 0xeba   :  { %1550 = vtanh.f32 %v760_v61  ;;  %v1257_v63 = vmul.f32 -1.442695, %v760_v61  ;;  %v1493_v61 = vpack.c.bf16 %v1109_v60, %v1108_v59 }
 0xebc   :  { %1552 = vpow2.f32 %v1257_v63  ;;  %1494 = vmatprep.subr.bf16.mxu0 %v1493_v61 }
 0xec4   :  { %v1551_v62 = vpop.eup %1550 }
 0xec5   :  { %773 = vrot.lane.b32.xlu1 %v1551_v62, %s1650_s4 }
 0xec6   :  { %v1553_v2 = vpop.eup %1552 }
 0xec7   :  { %v764_v5 = vadd.f32 1.0, %v1553_v2 }
 0xec9   :  { %1554 = vrcp.f32 %v764_v5 }
 0xed3   :  { %v1555_v3 = vpop.eup %1554 }
 0xed4   :  { %v771_v10 = vmul.f32 %v1555_v3, %v769_v0  ;;  %v1111_v0 = vld [vmem:[%s1957_s8 + $0x18] sm:$0xff] }
 0xf37   :  { %v774_v1 = vpop.permute.xlu1 %773 }
 0xf38   :  { %v776_v4 = vmul.f32 %v1555_v3, %v774_v1 }
 0xf3a   :  { %778 = vrot.lane.b32.xlu0 %v776_v4, %s1651_s30  ;;  %v1110_v4 = vld [vmem:[%s1957_s8 + $0x10] sm:$0xff]  ;;  %s1654_s8 = smov [#allocation7]  }
 0xfac   :  { %v779_v6 = vpop.permute.xlu0 %778 }
 0xfad   :  { %v781_v7 = vadd.f32 %v779_v6, %v771_v10  ;;  %v1497_v10 = vpack.c.bf16 %v1111_v0, %v1110_v4  ;;  %v1262_v6 = vld [vmem:[%s1956_s7] ss:$0 sm:$0xff] }
 0xfaf   :  { %1556 = vtanh.f32 %v781_v7  ;;  %v876_v27 = vrot.slane %v781_v7, 6 }
 0xfb9   :  { %v1557_v8 = vpop.eup %1556 }
 0xfba   :  { %784 = vrot.lane.b32.xlu1 %v1557_v8, %s1650_s4 }
0x102c   :  { %v785_v9 = vpop.permute.xlu1 %784 }
0x102d   :  { %v787_v11 = vmul.f32 %v1555_v3, %v785_v9 }
0x102f   :  { %v789_v12 = vrot.slane %v787_v11, 2  ;;  %v1007_v34 = vsel %vm70_vm1, %v1851_v56, %v787_v11  ;;  %v1013_v56 = vld [vmem:[%s1955_s6 + $0x18] sm:$0xff] }
0x1031   :  { %790 = vrot.lane.b32.xlu0 %v789_v12, %s1651_s30 }
0x10a3   :  { %v791_v13 = vpop.permute.xlu0 %790 }
0x10a4   :  { %1402 = vmatmul.mubr.msk.f32.vlgmr.msra.gmra.mrb[6].mxu1 %vm155_vm3, %v791_v13 }
0x10a5   :  { %1488 = vmatpush3.bf16.msra.mxu1 %v1485_v55 }
0x1177   :  { %v860_v15 = vpop.f32.mrb[6].mxu1 }
0x1178   :  { %v865_v17 = vrot.slane %v860_v15, 4  ;;  %v1403_v18 = vpop.f32.mrb[7].mxu1 }
0x117a   :  { %v867_v19 = vadd.f32 %v865_v17, %v1783_v14 }
0x117c   :  { %1558 = vtanh.f32 %v867_v19  ;;  %v1259_v21 = vmul.f32 -1.442695, %v867_v19 }
0x117e   :  { %1560 = vpow2.f32 %v1259_v21 }
0x1186   :  { %v1559_v20 = vpop.eup %1558 }
0x1187   :  { %880 = vrot.lane.b32.xlu1 %v1559_v20, %s1650_s4 }
0x1188   :  { %v1561_v22 = vpop.eup %1560 }
0x1189   :  { %v871_v23 = vadd.f32 1.0, %v1561_v22 }
0x118b   :  { %1562 = vrcp.f32 %v871_v23 }
0x1195   :  { %v1563_v24 = vpop.eup %1562 }
0x1196   :  { %v878_v28 = vmul.f32 %v1563_v24, %v876_v27 }
0x11f9   :  { %v881_v25 = vpop.permute.xlu1 %880 }
0x11fa   :  { %v883_v26 = vmul.f32 %v1563_v24, %v881_v25 }
0x11fc   :  { %885 = vrot.lane.b32.xlu0 %v883_v26, %s1651_s30 }
0x126e   :  { %v886_v29 = vpop.permute.xlu0 %885 }
0x126f   :  { %v888_v30 = vadd.f32 %v886_v29, %v878_v28 }
0x1271   :  { %1564 = vtanh.f32 %v888_v30  ;;  %v983_v49 = vrot.slane %v888_v30, 6 }
0x127b   :  { %v1565_v31 = vpop.eup %1564 }
0x127c   :  { %891 = vrot.lane.b32.xlu1 %v1565_v31, %s1650_s4 }
0x12ee   :  { %v892_v32 = vpop.permute.xlu1 %891 }
0x12ef   :  { %v894_v33 = vmul.f32 %v1563_v24, %v892_v32 }
0x12f1   :  { %v896_v16 = vrot.slane %v894_v33, 4  ;;  %v1008_v35 = vsel %vm1003_vm4, %v1007_v34, %v894_v33 }
0x12f3   :  { %897 = vrot.lane.b32.xlu0 %v896_v16, %s1651_s30 }
0x1365   :  { %v898_v36 = vpop.permute.xlu0 %897 }
0x1366   :  { %1413 = vmatmul.mubr.msk.f32.vlgmr.msra.gmra.mrb[8].mxu0 %vm155_vm3, %v898_v36 }
0x1367   :  { %1496 = vmatpush3.bf16.msra.mxu0 %v1493_v61 }
0x1368   :  { %1498 = vmatprep.subr.bf16.mxu0 %v1497_v10 }
0x136b   :  { %1500 = vmatpush3.bf16.msra.mxu0 %v1497_v10 }
0x1439   :  { %v967_v37 = vpop.f32.mrb[8].mxu0 }
0x143a   :  { %v972_v39 = vrot.slane %v967_v37, 2  ;;  %v1414_v40 = vpop.f32.mrb[9].mxu0 }
0x143c   :  { %v974_v41 = vadd.f32 %v972_v39, %v1783_v14 }
0x143e   :  { %1566 = vtanh.f32 %v974_v41  ;;  %v1261_v43 = vmul.f32 -1.442695, %v974_v41 }
0x1440   :  { %1568 = vpow2.f32 %v1261_v43 }
0x1448   :  { %v1567_v42 = vpop.eup %1566 }
0x1449   :  { %987 = vrot.lane.b32.xlu1 %v1567_v42, %s1650_s4 }
0x144a   :  { %v1569_v44 = vpop.eup %1568 }
0x144b   :  { %v978_v45 = vadd.f32 1.0, %v1569_v44 }
0x144d   :  { %1570 = vrcp.f32 %v978_v45 }
0x1457   :  { %v1571_v46 = vpop.eup %1570 }
0x1458   :  { %v985_v50 = vmul.f32 %v1571_v46, %v983_v49 }
0x14bb   :  { %v988_v47 = vpop.permute.xlu1 %987 }
0x14bc   :  { %v990_v48 = vmul.f32 %v1571_v46, %v988_v47 }
0x14be   :  { %992 = vrot.lane.b32.xlu0 %v990_v48, %s1651_s30 }
0x14c2   :  { %1023 = vrot.lane.b32.xlu0 %v1838_v38, %s1651_s30  ;;  %v1012_v38 = vld [vmem:[%s1955_s6 + $0x10] sm:$0xff]  ;;  %s1652_s6 = smov 96  }
0x14c3   :  { %v1489_v57 = vpack.c.bf16 %v1013_v56, %v1012_v38 }
0x14c5   :  { %1490 = vmatprep.subr.bf16.mxu1 %v1489_v57 }
0x14c6   :  { %1492 = vmatpush3.bf16.msra.mxu1 %v1489_v57 }
0x1530   :  { %v993_v14 = vpop.permute.xlu0 %992 }
0x1531   :  { %v995_v51 = vadd.f32 %v993_v14, %v985_v50 }
0x1533   :  { %1572 = vtanh.f32 %v995_v51 }
0x1534   :  { %v1024_v52 = vpop.permute.xlu0 %1023 }
0x1535   :  { %1423 = vmatprep.mubr.msk.f32.mxu1 %vm155_vm3, %v1024_v52 }
0x153d   :  { %v1573_v58 = vpop.eup %1572 }
0x153e   :  { %998 = vrot.lane.b32.xlu1 %v1573_v58, %s1650_s4  ;;  %s1227_s4 = sshll.u32 %s1654_s8, 4  ;;  %s1228_s4 = int_to_ptr.vmem [resolvable:$true] %s1227_s4 }
0x15b0   :  { %v999_v62 = vpop.permute.xlu1 %998 }
0x15b1   :  { %v1001_v63 = vmul.f32 %v1571_v46, %v999_v62 }
0x15b3   :  { %1199 = vrot.lane.b32.xlu0 %v1001_v63, %s1651_s30  ;;  %v1009_v2 = vsel %vm1005_vm5, %v1008_v35, %v1001_v63 }
0x15b4   :  { %1025 = vrot.lane.b32.xlu1 %v1009_v2, %s1651_s30 }
0x15b8   :  { %1205 = vrot.lane.b32.xlu1 %v995_v51, %s1652_s6 }
0x1625   :  { %v1200_v5 = vpop.permute.xlu0 %1199 }
0x1626   :  { %v1026_v3 = vpop.permute.xlu1 %1025  ;;  %1203 = vst.msk [vmem:[#allocation6 - $0x6] sm:$0xc0] %vm1202_vm6, %v1200_v5 }
0x1627   :  { %1424 = vmatmul.mubr.msk.f32.vlgmr.msra.gmra.mrb[8].mxu1 %vm155_vm3, %v1026_v3 }
0x162a   :  { %v1206_v1 = vpop.permute.xlu1 %1205 }
0x162b   :  { %1208 = vst.msk [vmem:[#allocation7 - $0x6] sm:$0xc0] %vm1202_vm6, %v1206_v1 }
0x16fa   :  { %v1425_v7 = vpop.f32.mrb[8].mxu1 }
0x16fb   :  { %v1103_v8 = vadd.f32 %v1425_v7, %v1262_v6  ;;  %v1097_v9 = vpop.f32.mrb[9].mxu1 }
0x16fc   :  { %v1098_v11 = vadd.f32 %v1262_v6, %v1097_v9 }
0x16fd   :  { %v1107_v13 = vmax.f32 %v1103_v8, 0.0 }
0x16fe   :  { %v1106_v12 = vmax.f32 %v1098_v11, 0.0 }
0x1700   :  { %1434 = vmatprep.mubr.msk.f32.mxu0 %vm155_vm3, %v1106_v12 }
0x1701   :  { %1435 = vmatmul.mubr.msk.f32.vlgmr.msra.gmra.mrb[10].mxu0 %vm155_vm3, %v1107_v13 }
0x1702   :  { %1607 = shalt.err (!%p1604_p12)
}
0x1703   :  { %s1608_s30 = scalar_lea.hbm %s1960_s11, 32 }
0x1704   :  { %p1609_p13 = scmp.ne.s32.totalorder %s1960_s11, %s1608_s30  ;;  %p1612_p0 = scmp.lt.u32.totalorder %s1608_s30, %s1960_s11 }
0x1706   :  { %p1614_p1 = pnand %p1612_p0, %p1609_p13 }
0x1708   :  { %1617 = shalt.err (!%p1614_p1)
}
0x1709   :  { %1220 = dma.vmem_to_hbm [thread:$0]  %s1218_s2, 32, %s1960_s11, [#allocation5]  }
0x170a   :  { %s1618_s18 = scalar_lea.vmem %s1228_s4, 32  ;;  %p1623_p3 = scmp.lt.s32.totalorder %s1228_s4, %s1228_s4 }
0x170b   :  { %p1619_p2 = scmp.ne.s32.totalorder %s1228_s4, %s1618_s18  ;;  %p1624_p4 = scmp.lt.s32.totalorder %s1618_s18, %s1618_s18 }
0x170d   :  { %p1625_p5 = por %p1624_p4, %p1623_p3 }
0x170f   :  { %p1626_p6 = pnand %p1625_p5, %p1619_p2 }
0x1711   :  { %1629 = shalt.err (!%p1626_p6)
}
0x1712   :  { %s1630_s20 = scalar_lea.hbm %s1961_s12, 32 }
0x1713   :  { %p1631_p7 = scmp.ne.s32.totalorder %s1961_s12, %s1630_s20  ;;  %p1634_p8 = scmp.lt.u32.totalorder %s1630_s20, %s1961_s12 }
0x1715   :  { %p1636_p9 = pnand %p1634_p8, %p1631_p7 }
0x1717   :  { %1639 = shalt.err (!%p1636_p9)
}
0x1718   :  { %1230 = dma.vmem_to_hbm [thread:$0]  %s1228_s4, 32, %s1961_s12, [#allocation8]   ;;  %v1113_v15 = vstv %s1958_s9  ;;  %vm1195_vm7 = vcmask 7168  }
0x17d4   :  { %v1436_v17 = vpop.f32.mrb[10].mxu0 }
0x17d5   :  { %v1192_v18 = vadd.f32 %v1436_v17, %v1113_v15  ;;  %v1186_v19 = vpop.f32.mrb[11].mxu0 }
0x17d6   :  { %v1187_v20 = vadd.f32 %v1186_v19, %v1113_v15 }
0x17d7   :  { %1197 = vst.msk [vmem:[%s1959_s10 + $0x8] sm:$0xff] %vm1195_vm7, %v1192_v18 }
0x17d8   :  { %1196 = vst.msk [vmem:[%s1959_s10] sm:$0xff] %vm1195_vm7, %v1187_v20 }
0x17d9   :  { %1642 = dma.done.wait [#allocation5], 32  }
0x17da   :  { %1643 = vsyncadd [#allocation5], 4294967264 }
0x17db   :  { %1644 = dma.done.wait [#allocation8], 32  }
0x17dc   :  { %1645 = vsyncadd [#allocation8], 4294967264 }
0x17dd   :  { %1239 = vsyncpa [#allocation4], 1 }
0x17de   :  { %1240 = vsyncpa [#allocation5], 1 }
0x17df   :  { %1241 = vsyncpa [#allocation8], 1 }

</bundles_post_ra>
